<compile_context>
chip_gen: v7x
topology: tpu7x:2x2x1
jax: 0.10.0
libtpu: 0.0.40
codegen_flags: <defaults>
</compile_context>

<pallas_src>
import functools
import math

import jax
import jax.numpy as jnp
from jax import lax
from jax.experimental import pallas as pl
from jax.experimental.pallas import tpu as pltpu


def _attention_kernel(x_ref, wqt_ref, bq_ref, wkt_ref, bk_ref, wvt_ref, bv_ref,
                      wot_ref, bo_ref, gamma_ref, beta_ref, o_ref,
                      *, num_heads, head_dim, eps, matmul_dtype):
    # x_ref block: (1, S, D)
    x = x_ref[0]                                   # (S, D) input dtype
    x_f32 = x.astype(jnp.float32)
    S, D = x.shape

    xm = x.astype(matmul_dtype)

    # QKV projections. Weights arrive pre-transposed: y = x @ W.T + b == x @ Wt + b.
    q = jnp.dot(xm, wqt_ref[...], preferred_element_type=jnp.float32) + bq_ref[0]
    k = jnp.dot(xm, wkt_ref[...], preferred_element_type=jnp.float32) + bk_ref[0]
    v = jnp.dot(xm, wvt_ref[...], preferred_element_type=jnp.float32) + bv_ref[0]

    # Fold 1/sqrt(head_dim) into q once (instead of scaling each (S,S) score).
    q = q * (1.0 / math.sqrt(float(head_dim)))

    # Accumulate the output projection per head: no lane-dim concat, no
    # lane-sliced `context` tensor; matmul outputs stay lane-dense (width D).
    attn = jnp.zeros((S, D), jnp.float32)
    contract_last = (((1,), (1,)), ((), ()))       # qh . kh^T without explicit .T

    for h in range(num_heads):
        lo = h * head_dim
        qh = q[:, lo:lo + head_dim]                # (S, hd) f32
        kh = k[:, lo:lo + head_dim]
        vh = v[:, lo:lo + head_dim]

        s = lax.dot_general(qh.astype(matmul_dtype), kh.astype(matmul_dtype),
                            dimension_numbers=contract_last,
                            preferred_element_type=jnp.float32)       # (S, S)
        s = s - jnp.max(s, axis=-1, keepdims=True)
        p = jnp.exp(s)
        p_sum = jnp.sum(p, axis=-1, keepdims=True)
        p = p * pl.reciprocal(p_sum, approx=True)
        # (dropout == identity in eval mode)

        ctx_h = jnp.dot(p.astype(matmul_dtype), vh.astype(matmul_dtype),
                        preferred_element_type=jnp.float32)           # (S, hd)
        # Output projection contribution of this head (wot is W_o.T, (D, D)).
        attn = attn + jnp.dot(ctx_h.astype(matmul_dtype),
                              wot_ref[lo:lo + head_dim, :],
                              preferred_element_type=jnp.float32)     # (S, D)

    attn = attn + bo_ref[0]

    # Residual + LayerNorm (f32 statistics).
    y = x_f32 + attn
    mu = jnp.mean(y, axis=-1, keepdims=True)
    var = jnp.mean((y - mu) ** 2, axis=-1, keepdims=True)
    y_norm = (y - mu) * lax.rsqrt(var + eps)
    out = y_norm * gamma_ref[0] + beta_ref[0]

    o_ref[0] = out.astype(o_ref.dtype)


def attention_module_forward(x, params, *, num_heads, matmul_dtype=jnp.float32):
    """Forward of AttentionModule.

    x: (B, S, D) or (B, D) float32.
    params: dict with wq, bq, wk, bk, wv, bv, wo, bo, gamma, beta (PyTorch layout).
    matmul_dtype: dtype of MXU operands (jnp.float32 or jnp.bfloat16);
                  accumulation, softmax and LayerNorm are always f32.
    """
    squeezed = False
    if x.ndim == 2:
        x = x[:, None, :]          # unsqueeze(1)
        squeezed = True

    B, S, D = x.shape
    head_dim = D // num_heads
    assert head_dim * num_heads == D, "input_dim must be divisible by num_heads"

    # One-time layout prep OUTSIDE the kernel: pre-transpose (out,in) -> (in,out)
    # and cast weights to the MXU operand dtype.
    wqt = params["wq"].T.astype(matmul_dtype)
    wkt = params["wk"].T.astype(matmul_dtype)
    wvt = params["wv"].T.astype(matmul_dtype)
    wot = params["wo"].T.astype(matmul_dtype)

    # Biases / LN params as (1, D) f32 for a clean 2D VMEM layout.
    bq = params["bq"].reshape(1, D).astype(jnp.float32)
    bk = params["bk"].reshape(1, D).astype(jnp.float32)
    bv = params["bv"].reshape(1, D).astype(jnp.float32)
    bo = params["bo"].reshape(1, D).astype(jnp.float32)
    gamma = params["gamma"].reshape(1, D).astype(jnp.float32)
    beta = params["beta"].reshape(1, D).astype(jnp.float32)

    kernel = functools.partial(
        _attention_kernel, num_heads=num_heads, head_dim=head_dim, eps=1e-5,
        matmul_dtype=matmul_dtype)

    full_mat = pl.BlockSpec((D, D), lambda b: (0, 0))   # weights stay resident
    full_vec = pl.BlockSpec((1, D), lambda b: (0, 0))

    out = pl.pallas_call(
        kernel,
        out_shape=jax.ShapeDtypeStruct((B, S, D), x.dtype),
        grid_spec=pltpu.PrefetchScalarGridSpec(
            num_scalar_prefetch=0,
            grid=(B,),
            in_specs=[
                pl.BlockSpec((1, S, D), lambda b: (b, 0, 0)),  # x
                full_mat, full_vec,    # wq.T, bq
                full_mat, full_vec,    # wk.T, bk
                full_mat, full_vec,    # wv.T, bv
                full_mat, full_vec,    # wo.T, bo
                full_vec, full_vec,    # gamma, beta
            ],
            out_specs=pl.BlockSpec((1, S, D), lambda b: (b, 0, 0)),
        ),
        compiler_params=pltpu.CompilerParams(
            dimension_semantics=("parallel",),
            vmem_limit_bytes=48 * 1024 * 1024),
    )(x, wqt, bq, wkt, bk, wvt, bv, wot, bo, gamma, beta)

    if squeezed:
        out = out[:, 0, :]        # squeeze(1)
    return out


def _reference_forward(x, params, *, num_heads):
    """Pure-JAX reference (mirrors the PyTorch forward in eval mode)."""
    squeezed = False
    if x.ndim == 2:
        x = x[:, None, :]
        squeezed = True
    B, S, D = x.shape
    hd = D // num_heads

    def linear(a, w, b):
        return a @ w.T + b

    q = linear(x, params["wq"], params["bq"]).reshape(B, S, num_heads, hd).transpose(0, 2, 1, 3)
    k = linear(x, params["wk"], params["bk"]).reshape(B, S, num_heads, hd).transpose(0, 2, 1, 3)
    v = linear(x, params["wv"], params["bv"]).reshape(B, S, num_heads, hd).transpose(0, 2, 1, 3)
    scores = jnp.einsum("bhqd,bhkd->bhqk", q, k) / jnp.sqrt(jnp.float32(hd))
    p = jax.nn.softmax(scores, axis=-1)
    ctx = jnp.einsum("bhqk,bhkd->bhqd", p, v).transpose(0, 2, 1, 3).reshape(B, S, D)
    attn_out = linear(ctx, params["wo"], params["bo"])
    y = x + attn_out
    mu = jnp.mean(y, axis=-1, keepdims=True)
    var = jnp.mean((y - mu) ** 2, axis=-1, keepdims=True)
    out = (y - mu) / jnp.sqrt(var + 1e-5) * params["gamma"] + params["beta"]
    if squeezed:
        out = out[:, 0, :]
    return out


def init_params(key, input_dim):
    """Deterministic parameter init (uniform, like PyTorch nn.Linear default)."""
    keys = jax.random.split(key, 8)
    bound = 1.0 / math.sqrt(input_dim)

    def u(k, shape):
        return jax.random.uniform(k, shape, jnp.float32, -bound, bound)

    return {
        "wq": u(keys[0], (input_dim, input_dim)), "bq": u(keys[1], (input_dim,)),
        "wk": u(keys[2], (input_dim, input_dim)), "bk": u(keys[3], (input_dim,)),
        "wv": u(keys[4], (input_dim, input_dim)), "bv": u(keys[5], (input_dim,)),
        "wo": u(keys[6], (input_dim, input_dim)), "bo": u(keys[7], (input_dim,)),
        "gamma": jnp.ones((input_dim,), jnp.float32),
        "beta": jnp.zeros((input_dim,), jnp.float32),
    }


if __name__ == "__main__":
    B, S, D = 2, 8, 32
    NUM_HEADS = 4

    key = jax.random.PRNGKey(0)
    k_x, k_x2, k_p = jax.random.split(key, 3)
    x = jax.random.normal(k_x, (B, S, D), jnp.float32)
    x2d = jax.random.normal(k_x2, (3, D), jnp.float32)   # (B, D) path -> seq=1
    params = init_params(k_p, D)

    # 1) f32-operand path (default), 3-D input.
    out = jax.block_until_ready(
        attention_module_forward(x, params, num_heads=NUM_HEADS))
    ref = _reference_forward(x, params, num_heads=NUM_HEADS)
    assert out.shape == (B, S, D)
    # atol/rtol slightly loosened vs 1e-4 because of the EUP approx reciprocal
    # in the softmax normalization.
    assert jnp.allclose(out, ref, atol=2e-3, rtol=2e-3), "f32 path mismatch"

    # 2) 2-D input path (unsqueeze/squeeze, seq_length == 1).
    out2 = jax.block_until_ready(
        attention_module_forward(x2d, params, num_heads=NUM_HEADS))
    ref2 = _reference_forward(x2d, params, num_heads=NUM_HEADS)
    assert out2.shape == (3, D)
    assert jnp.allclose(out2, ref2, atol=2e-3, rtol=2e-3), "2D path mismatch"

    # 3) bf16 MXU-operand path (v6e/v7x optimization); f32 accumulation + f32
    #    softmax/LayerNorm keep the error modest.
    out_bf16 = jax.block_until_ready(
        attention_module_forward(x, params, num_heads=NUM_HEADS,
                                 matmul_dtype=jnp.bfloat16))
    assert out_bf16.shape == (B, S, D)
    assert jnp.allclose(out_bf16, ref, atol=5e-2, rtol=5e-2), "bf16 path mismatch"

    print("KERNEL_OK")
</pallas_src>

<mosaic_0001>
module attributes {stable_mosaic.version = 11 : i64} {
  func.func @_attention_kernel(%arg0: i32, %arg1: memref<1x8x32xf32, #tpu.memory_space<vmem>>, %arg2: memref<32x32xf32, #tpu.memory_space<vmem>>, %arg3: memref<1x32xf32, #tpu.memory_space<vmem>>, %arg4: memref<32x32xf32, #tpu.memory_space<vmem>>, %arg5: memref<1x32xf32, #tpu.memory_space<vmem>>, %arg6: memref<32x32xf32, #tpu.memory_space<vmem>>, %arg7: memref<1x32xf32, #tpu.memory_space<vmem>>, %arg8: memref<32x32xf32, #tpu.memory_space<vmem>>, %arg9: memref<1x32xf32, #tpu.memory_space<vmem>>, %arg10: memref<1x32xf32, #tpu.memory_space<vmem>>, %arg11: memref<1x32xf32, #tpu.memory_space<vmem>>, %arg12: memref<1x8x32xf32, #tpu.memory_space<vmem>>) attributes {dimension_semantics = [#tpu.dimension_semantics<parallel>], iteration_bounds = array<i64: 2>, scalar_prefetch = 0 : i64, scratch_operands = 0 : i64, tpu.core_type = #tpu.core_type<tc>, window_params = [{transform_indices = @transform_0, window_bounds = array<i64: 1, 8, 32>}, {pipeline_mode = #tpu.pipeline_mode<synchronous>, transform_indices = @transform_1, window_bounds = array<i64: 32, 32>}, {pipeline_mode = #tpu.pipeline_mode<synchronous>, transform_indices = @transform_2, window_bounds = array<i64: 1, 32>}, {pipeline_mode = #tpu.pipeline_mode<synchronous>, transform_indices = @transform_3, window_bounds = array<i64: 32, 32>}, {pipeline_mode = #tpu.pipeline_mode<synchronous>, transform_indices = @transform_4, window_bounds = array<i64: 1, 32>}, {pipeline_mode = #tpu.pipeline_mode<synchronous>, transform_indices = @transform_5, window_bounds = array<i64: 32, 32>}, {pipeline_mode = #tpu.pipeline_mode<synchronous>, transform_indices = @transform_6, window_bounds = array<i64: 1, 32>}, {pipeline_mode = #tpu.pipeline_mode<synchronous>, transform_indices = @transform_7, window_bounds = array<i64: 32, 32>}, {pipeline_mode = #tpu.pipeline_mode<synchronous>, transform_indices = @transform_8, window_bounds = array<i64: 1, 32>}, {pipeline_mode = #tpu.pipeline_mode<synchronous>, transform_indices = @transform_9, window_bounds = array<i64: 1, 32>}, {pipeline_mode = #tpu.pipeline_mode<synchronous>, transform_indices = @transform_10, window_bounds = array<i64: 1, 32>}, {transform_indices = @transform_11, window_bounds = array<i64: 1, 8, 32>}]} {
    %c0 = arith.constant 0 : index
    %c0_0 = arith.constant 0 : index
    %c0_1 = arith.constant 0 : index
    %0 = vector.load %arg1[%c0, %c0_0, %c0_1] : memref<1x8x32xf32, #tpu.memory_space<vmem>>, vector<1x8x32xf32>
    %1 = vector.shape_cast %0 : vector<1x8x32xf32> to vector<8x32xf32>
    %c0_2 = arith.constant 0 : index
    %c0_3 = arith.constant 0 : index
    %2 = vector.load %arg2[%c0_2, %c0_3] : memref<32x32xf32, #tpu.memory_space<vmem>>, vector<32x32xf32>
    %cst = arith.constant dense<0.000000e+00> : vector<8x32xf32>
    %3 = tpu.matmul %1, %2, %cst {dimension_numbers = #tpu.dot_dimension_numbers<[1], [0], [0], [1], [0, 0, 1, 1], [], []>} : vector<8x32xf32>, vector<32x32xf32>, vector<8x32xf32> -> vector<8x32xf32>
    %c0_4 = arith.constant 0 : index
    %c0_5 = arith.constant 0 : index
    %4 = vector.load %arg3[%c0_4, %c0_5] : memref<1x32xf32, #tpu.memory_space<vmem>>, vector<1x32xf32>
    %5 = vector.shape_cast %4 : vector<1x32xf32> to vector<32xf32>
    %6 = vector.shape_cast %5 : vector<32xf32> to vector<1x32xf32>
    %7 = vector.broadcast %6 : vector<1x32xf32> to vector<8x32xf32>
    %8 = arith.addf %3, %7 : vector<8x32xf32>
    %c0_6 = arith.constant 0 : index
    %c0_7 = arith.constant 0 : index
    %9 = vector.load %arg4[%c0_6, %c0_7] : memref<32x32xf32, #tpu.memory_space<vmem>>, vector<32x32xf32>
    %cst_8 = arith.constant dense<0.000000e+00> : vector<8x32xf32>
    %10 = tpu.matmul %1, %9, %cst_8 {dimension_numbers = #tpu.dot_dimension_numbers<[1], [0], [0], [1], [0, 0, 1, 1], [], []>} : vector<8x32xf32>, vector<32x32xf32>, vector<8x32xf32> -> vector<8x32xf32>
    %c0_9 = arith.constant 0 : index
    %c0_10 = arith.constant 0 : index
    %11 = vector.load %arg5[%c0_9, %c0_10] : memref<1x32xf32, #tpu.memory_space<vmem>>, vector<1x32xf32>
    %12 = vector.shape_cast %11 : vector<1x32xf32> to vector<32xf32>
    %13 = vector.shape_cast %12 : vector<32xf32> to vector<1x32xf32>
    %14 = vector.broadcast %13 : vector<1x32xf32> to vector<8x32xf32>
    %15 = arith.addf %10, %14 : vector<8x32xf32>
    %c0_11 = arith.constant 0 : index
    %c0_12 = arith.constant 0 : index
    %16 = vector.load %arg6[%c0_11, %c0_12] : memref<32x32xf32, #tpu.memory_space<vmem>>, vector<32x32xf32>
    %cst_13 = arith.constant dense<0.000000e+00> : vector<8x32xf32>
    %17 = tpu.matmul %1, %16, %cst_13 {dimension_numbers = #tpu.dot_dimension_numbers<[1], [0], [0], [1], [0, 0, 1, 1], [], []>} : vector<8x32xf32>, vector<32x32xf32>, vector<8x32xf32> -> vector<8x32xf32>
    %c0_14 = arith.constant 0 : index
    %c0_15 = arith.constant 0 : index
    %18 = vector.load %arg7[%c0_14, %c0_15] : memref<1x32xf32, #tpu.memory_space<vmem>>, vector<1x32xf32>
    %19 = vector.shape_cast %18 : vector<1x32xf32> to vector<32xf32>
    %20 = vector.shape_cast %19 : vector<32xf32> to vector<1x32xf32>
    %21 = vector.broadcast %20 : vector<1x32xf32> to vector<8x32xf32>
    %22 = arith.addf %17, %21 : vector<8x32xf32>
    %cst_16 = arith.constant 0.353553385 : f32
    %23 = vector.broadcast %cst_16 : f32 to vector<8x32xf32>
    %24 = arith.mulf %8, %23 : vector<8x32xf32>
    %cst_17 = arith.constant 0.000000e+00 : f32
    %25 = vector.broadcast %cst_17 : f32 to vector<8x32xf32>
    %26 = vector.extract_strided_slice %24 {offsets = [0, 0], sizes = [8, 8], strides = [1, 1]} : vector<8x32xf32> to vector<8x8xf32>
    %27 = vector.extract_strided_slice %15 {offsets = [0, 0], sizes = [8, 8], strides = [1, 1]} : vector<8x32xf32> to vector<8x8xf32>
    %28 = vector.extract_strided_slice %22 {offsets = [0, 0], sizes = [8, 8], strides = [1, 1]} : vector<8x32xf32> to vector<8x8xf32>
    %cst_18 = arith.constant dense<0.000000e+00> : vector<8x8xf32>
    %29 = tpu.matmul %26, %27, %cst_18 {dimension_numbers = #tpu.dot_dimension_numbers<[1], [1], [0], [0], [0, 0, 1, 0], [], []>} : vector<8x8xf32>, vector<8x8xf32>, vector<8x8xf32> -> vector<8x8xf32>
    %cst_19 = arith.constant dense<0xFF800000> : vector<8xf32>
    %30 = vector.multi_reduction <maximumf>, %29, %cst_19 [1] : vector<8x8xf32> to vector<8xf32>
    %31 = vector.shape_cast %30 : vector<8xf32> to vector<8x1xf32>
    %32 = vector.broadcast %31 : vector<8x1xf32> to vector<8x8xf32>
    %33 = arith.subf %29, %32 : vector<8x8xf32>
    %34 = math.exp %33 : vector<8x8xf32>
    %cst_20 = arith.constant dense<0.000000e+00> : vector<8xf32>
    %35 = vector.multi_reduction <add>, %34, %cst_20 [1] : vector<8x8xf32> to vector<8xf32>
    %36 = vector.shape_cast %35 : vector<8xf32> to vector<8x1xf32>
    %37 = tpu.reciprocal %36 {approx = true} : vector<8x1xf32> -> vector<8x1xf32>
    %38 = vector.broadcast %37 : vector<8x1xf32> to vector<8x8xf32>
    %39 = arith.mulf %34, %38 : vector<8x8xf32>
    %cst_21 = arith.constant dense<0.000000e+00> : vector<8x8xf32>
    %40 = tpu.matmul %39, %28, %cst_21 {dimension_numbers = #tpu.dot_dimension_numbers<[1], [0], [0], [1], [0, 0, 1, 1], [], []>} : vector<8x8xf32>, vector<8x8xf32>, vector<8x8xf32> -> vector<8x8xf32>
    %c0_22 = arith.constant 0 : index
    %c0_23 = arith.constant 0 : index
    %41 = vector.load %arg8[%c0_22, %c0_23] : memref<32x32xf32, #tpu.memory_space<vmem>>, vector<8x32xf32>
    %cst_24 = arith.constant dense<0.000000e+00> : vector<8x32xf32>
    %42 = tpu.matmul %40, %41, %cst_24 {dimension_numbers = #tpu.dot_dimension_numbers<[1], [0], [0], [1], [0, 0, 1, 1], [], []>} : vector<8x8xf32>, vector<8x32xf32>, vector<8x32xf32> -> vector<8x32xf32>
    %43 = arith.addf %25, %42 : vector<8x32xf32>
    %44 = vector.extract_strided_slice %24 {offsets = [0, 8], sizes = [8, 8], strides = [1, 1]} : vector<8x32xf32> to vector<8x8xf32>
    %45 = vector.extract_strided_slice %15 {offsets = [0, 8], sizes = [8, 8], strides = [1, 1]} : vector<8x32xf32> to vector<8x8xf32>
    %46 = vector.extract_strided_slice %22 {offsets = [0, 8], sizes = [8, 8], strides = [1, 1]} : vector<8x32xf32> to vector<8x8xf32>
    %cst_25 = arith.constant dense<0.000000e+00> : vector<8x8xf32>
    %47 = tpu.matmul %44, %45, %cst_25 {dimension_numbers = #tpu.dot_dimension_numbers<[1], [1], [0], [0], [0, 0, 1, 0], [], []>} : vector<8x8xf32>, vector<8x8xf32>, vector<8x8xf32> -> vector<8x8xf32>
    %cst_26 = arith.constant dense<0xFF800000> : vector<8xf32>
    %48 = vector.multi_reduction <maximumf>, %47, %cst_26 [1] : vector<8x8xf32> to vector<8xf32>
    %49 = vector.shape_cast %48 : vector<8xf32> to vector<8x1xf32>
    %50 = vector.broadcast %49 : vector<8x1xf32> to vector<8x8xf32>
    %51 = arith.subf %47, %50 : vector<8x8xf32>
    %52 = math.exp %51 : vector<8x8xf32>
    %cst_27 = arith.constant dense<0.000000e+00> : vector<8xf32>
    %53 = vector.multi_reduction <add>, %52, %cst_27 [1] : vector<8x8xf32> to vector<8xf32>
    %54 = vector.shape_cast %53 : vector<8xf32> to vector<8x1xf32>
    %55 = tpu.reciprocal %54 {approx = true} : vector<8x1xf32> -> vector<8x1xf32>
    %56 = vector.broadcast %55 : vector<8x1xf32> to vector<8x8xf32>
    %57 = arith.mulf %52, %56 : vector<8x8xf32>
    %cst_28 = arith.constant dense<0.000000e+00> : vector<8x8xf32>
    %58 = tpu.matmul %57, %46, %cst_28 {dimension_numbers = #tpu.dot_dimension_numbers<[1], [0], [0], [1], [0, 0, 1, 1], [], []>} : vector<8x8xf32>, vector<8x8xf32>, vector<8x8xf32> -> vector<8x8xf32>
    %c8 = arith.constant 8 : index
    %c0_29 = arith.constant 0 : index
    %59 = vector.load %arg8[%c8, %c0_29] : memref<32x32xf32, #tpu.memory_space<vmem>>, vector<8x32xf32>
    %cst_30 = arith.constant dense<0.000000e+00> : vector<8x32xf32>
    %60 = tpu.matmul %58, %59, %cst_30 {dimension_numbers = #tpu.dot_dimension_numbers<[1], [0], [0], [1], [0, 0, 1, 1], [], []>} : vector<8x8xf32>, vector<8x32xf32>, vector<8x32xf32> -> vector<8x32xf32>
    %61 = arith.addf %43, %60 : vector<8x32xf32>
    %62 = vector.extract_strided_slice %24 {offsets = [0, 16], sizes = [8, 8], strides = [1, 1]} : vector<8x32xf32> to vector<8x8xf32>
    %63 = vector.extract_strided_slice %15 {offsets = [0, 16], sizes = [8, 8], strides = [1, 1]} : vector<8x32xf32> to vector<8x8xf32>
    %64 = vector.extract_strided_slice %22 {offsets = [0, 16], sizes = [8, 8], strides = [1, 1]} : vector<8x32xf32> to vector<8x8xf32>
    %cst_31 = arith.constant dense<0.000000e+00> : vector<8x8xf32>
    %65 = tpu.matmul %62, %63, %cst_31 {dimension_numbers = #tpu.dot_dimension_numbers<[1], [1], [0], [0], [0, 0, 1, 0], [], []>} : vector<8x8xf32>, vector<8x8xf32>, vector<8x8xf32> -> vector<8x8xf32>
    %cst_32 = arith.constant dense<0xFF800000> : vector<8xf32>
    %66 = vector.multi_reduction <maximumf>, %65, %cst_32 [1] : vector<8x8xf32> to vector<8xf32>
    %67 = vector.shape_cast %66 : vector<8xf32> to vector<8x1xf32>
    %68 = vector.broadcast %67 : vector<8x1xf32> to vector<8x8xf32>
    %69 = arith.subf %65, %68 : vector<8x8xf32>
    %70 = math.exp %69 : vector<8x8xf32>
    %cst_33 = arith.constant dense<0.000000e+00> : vector<8xf32>
    %71 = vector.multi_reduction <add>, %70, %cst_33 [1] : vector<8x8xf32> to vector<8xf32>
    %72 = vector.shape_cast %71 : vector<8xf32> to vector<8x1xf32>
    %73 = tpu.reciprocal %72 {approx = true} : vector<8x1xf32> -> vector<8x1xf32>
    %74 = vector.broadcast %73 : vector<8x1xf32> to vector<8x8xf32>
    %75 = arith.mulf %70, %74 : vector<8x8xf32>
    %cst_34 = arith.constant dense<0.000000e+00> : vector<8x8xf32>
    %76 = tpu.matmul %75, %64, %cst_34 {dimension_numbers = #tpu.dot_dimension_numbers<[1], [0], [0], [1], [0, 0, 1, 1], [], []>} : vector<8x8xf32>, vector<8x8xf32>, vector<8x8xf32> -> vector<8x8xf32>
    %c16 = arith.constant 16 : index
    %c0_35 = arith.constant 0 : index
    %77 = vector.load %arg8[%c16, %c0_35] : memref<32x32xf32, #tpu.memory_space<vmem>>, vector<8x32xf32>
    %cst_36 = arith.constant dense<0.000000e+00> : vector<8x32xf32>
    %78 = tpu.matmul %76, %77, %cst_36 {dimension_numbers = #tpu.dot_dimension_numbers<[1], [0], [0], [1], [0, 0, 1, 1], [], []>} : vector<8x8xf32>, vector<8x32xf32>, vector<8x32xf32> -> vector<8x32xf32>
    %79 = arith.addf %61, %78 : vector<8x32xf32>
    %80 = vector.extract_strided_slice %24 {offsets = [0, 24], sizes = [8, 8], strides = [1, 1]} : vector<8x32xf32> to vector<8x8xf32>
    %81 = vector.extract_strided_slice %15 {offsets = [0, 24], sizes = [8, 8], strides = [1, 1]} : vector<8x32xf32> to vector<8x8xf32>
    %82 = vector.extract_strided_slice %22 {offsets = [0, 24], sizes = [8, 8], strides = [1, 1]} : vector<8x32xf32> to vector<8x8xf32>
    %cst_37 = arith.constant dense<0.000000e+00> : vector<8x8xf32>
    %83 = tpu.matmul %80, %81, %cst_37 {dimension_numbers = #tpu.dot_dimension_numbers<[1], [1], [0], [0], [0, 0, 1, 0], [], []>} : vector<8x8xf32>, vector<8x8xf32>, vector<8x8xf32> -> vector<8x8xf32>
    %cst_38 = arith.constant dense<0xFF800000> : vector<8xf32>
    %84 = vector.multi_reduction <maximumf>, %83, %cst_38 [1] : vector<8x8xf32> to vector<8xf32>
    %85 = vector.shape_cast %84 : vector<8xf32> to vector<8x1xf32>
    %86 = vector.broadcast %85 : vector<8x1xf32> to vector<8x8xf32>
    %87 = arith.subf %83, %86 : vector<8x8xf32>
    %88 = math.exp %87 : vector<8x8xf32>
    %cst_39 = arith.constant dense<0.000000e+00> : vector<8xf32>
    %89 = vector.multi_reduction <add>, %88, %cst_39 [1] : vector<8x8xf32> to vector<8xf32>
    %90 = vector.shape_cast %89 : vector<8xf32> to vector<8x1xf32>
    %91 = tpu.reciprocal %90 {approx = true} : vector<8x1xf32> -> vector<8x1xf32>
    %92 = vector.broadcast %91 : vector<8x1xf32> to vector<8x8xf32>
    %93 = arith.mulf %88, %92 : vector<8x8xf32>
    %cst_40 = arith.constant dense<0.000000e+00> : vector<8x8xf32>
    %94 = tpu.matmul %93, %82, %cst_40 {dimension_numbers = #tpu.dot_dimension_numbers<[1], [0], [0], [1], [0, 0, 1, 1], [], []>} : vector<8x8xf32>, vector<8x8xf32>, vector<8x8xf32> -> vector<8x8xf32>
    %c24 = arith.constant 24 : index
    %c0_41 = arith.constant 0 : index
    %95 = vector.load %arg8[%c24, %c0_41] : memref<32x32xf32, #tpu.memory_space<vmem>>, vector<8x32xf32>
    %cst_42 = arith.constant dense<0.000000e+00> : vector<8x32xf32>
    %96 = tpu.matmul %94, %95, %cst_42 {dimension_numbers = #tpu.dot_dimension_numbers<[1], [0], [0], [1], [0, 0, 1, 1], [], []>} : vector<8x8xf32>, vector<8x32xf32>, vector<8x32xf32> -> vector<8x32xf32>
    %97 = arith.addf %79, %96 : vector<8x32xf32>
    %c0_43 = arith.constant 0 : index
    %c0_44 = arith.constant 0 : index
    %98 = vector.load %arg9[%c0_43, %c0_44] : memref<1x32xf32, #tpu.memory_space<vmem>>, vector<1x32xf32>
    %99 = vector.shape_cast %98 : vector<1x32xf32> to vector<32xf32>
    %100 = vector.shape_cast %99 : vector<32xf32> to vector<1x32xf32>
    %101 = vector.broadcast %100 : vector<1x32xf32> to vector<8x32xf32>
    %102 = arith.addf %97, %101 : vector<8x32xf32>
    %103 = arith.addf %1, %102 : vector<8x32xf32>
    %cst_45 = arith.constant dense<0.000000e+00> : vector<8xf32>
    %104 = vector.multi_reduction <add>, %103, %cst_45 [1] : vector<8x32xf32> to vector<8xf32>
    %105 = vector.shape_cast %104 : vector<8xf32> to vector<8x1xf32>
    %cst_46 = arith.constant 3.200000e+01 : f32
    %106 = vector.broadcast %cst_46 : f32 to vector<8x1xf32>
    %107 = arith.divf %105, %106 : vector<8x1xf32>
    %108 = vector.broadcast %107 : vector<8x1xf32> to vector<8x32xf32>
    %109 = arith.subf %103, %108 : vector<8x32xf32>
    %110 = arith.mulf %109, %109 : vector<8x32xf32>
    %cst_47 = arith.constant dense<0.000000e+00> : vector<8xf32>
    %111 = vector.multi_reduction <add>, %110, %cst_47 [1] : vector<8x32xf32> to vector<8xf32>
    %112 = vector.shape_cast %111 : vector<8xf32> to vector<8x1xf32>
    %cst_48 = arith.constant 3.200000e+01 : f32
    %113 = vector.broadcast %cst_48 : f32 to vector<8x1xf32>
    %114 = arith.divf %112, %113 : vector<8x1xf32>
    %115 = vector.broadcast %107 : vector<8x1xf32> to vector<8x32xf32>
    %116 = arith.subf %103, %115 : vector<8x32xf32>
    %cst_49 = arith.constant 9.99999974E-6 : f32
    %117 = vector.broadcast %cst_49 : f32 to vector<8x1xf32>
    %118 = arith.addf %114, %117 : vector<8x1xf32>
    %119 = math.rsqrt %118 : vector<8x1xf32>
    %120 = vector.broadcast %119 : vector<8x1xf32> to vector<8x32xf32>
    %121 = arith.mulf %116, %120 : vector<8x32xf32>
    %c0_50 = arith.constant 0 : index
    %c0_51 = arith.constant 0 : index
    %122 = vector.load %arg10[%c0_50, %c0_51] : memref<1x32xf32, #tpu.memory_space<vmem>>, vector<1x32xf32>
    %123 = vector.shape_cast %122 : vector<1x32xf32> to vector<32xf32>
    %124 = vector.shape_cast %123 : vector<32xf32> to vector<1x32xf32>
    %125 = vector.broadcast %124 : vector<1x32xf32> to vector<8x32xf32>
    %126 = arith.mulf %121, %125 : vector<8x32xf32>
    %c0_52 = arith.constant 0 : index
    %c0_53 = arith.constant 0 : index
    %127 = vector.load %arg11[%c0_52, %c0_53] : memref<1x32xf32, #tpu.memory_space<vmem>>, vector<1x32xf32>
    %128 = vector.shape_cast %127 : vector<1x32xf32> to vector<32xf32>
    %129 = vector.shape_cast %128 : vector<32xf32> to vector<1x32xf32>
    %130 = vector.broadcast %129 : vector<1x32xf32> to vector<8x32xf32>
    %131 = arith.addf %126, %130 : vector<8x32xf32>
    %c0_54 = arith.constant 0 : index
    %c0_55 = arith.constant 0 : index
    %c0_56 = arith.constant 0 : index
    %132 = vector.load %arg12[%c0_54, %c0_55, %c0_56] : memref<1x8x32xf32, #tpu.memory_space<vmem>>, vector<1x8x32xf32>
    %133 = vector.shape_cast %132 : vector<1x8x32xf32> to vector<8x32xf32>
    %134 = vector.shape_cast %131 : vector<8x32xf32> to vector<1x8x32xf32>
    tpu.vector_store %arg12[%c0_54, %c0_55, %c0_56], %134 {strides = array<i32>} : memref<1x8x32xf32, #tpu.memory_space<vmem>>, vector<1x8x32xf32>,
    return
  }
  func.func @transform_0(%arg0: i32) -> (i32, i32, i32) {
    %c0_i32 = arith.constant 0 : i32
    %c0_i32_0 = arith.constant 0 : i32
    %c0_i32_1 = arith.constant 0 : i32
    return %arg0, %c0_i32, %c0_i32_0 : i32, i32, i32
  }
  func.func @transform_1(%arg0: i32) -> (i32, i32) {
    %c0_i32 = arith.constant 0 : i32
    %c0_i32_0 = arith.constant 0 : i32
    %c0_i32_1 = arith.constant 0 : i32
    return %c0_i32, %c0_i32_0 : i32, i32
  }
  func.func @transform_2(%arg0: i32) -> (i32, i32) {
    %c0_i32 = arith.constant 0 : i32
    %c0_i32_0 = arith.constant 0 : i32
    %c0_i32_1 = arith.constant 0 : i32
    return %c0_i32, %c0_i32_0 : i32, i32
  }
  func.func @transform_3(%arg0: i32) -> (i32, i32) {
    %c0_i32 = arith.constant 0 : i32
    %c0_i32_0 = arith.constant 0 : i32
    %c0_i32_1 = arith.constant 0 : i32
    return %c0_i32, %c0_i32_0 : i32, i32
  }
  func.func @transform_4(%arg0: i32) -> (i32, i32) {
    %c0_i32 = arith.constant 0 : i32
    %c0_i32_0 = arith.constant 0 : i32
    %c0_i32_1 = arith.constant 0 : i32
    return %c0_i32, %c0_i32_0 : i32, i32
  }
  func.func @transform_5(%arg0: i32) -> (i32, i32) {
    %c0_i32 = arith.constant 0 : i32
    %c0_i32_0 = arith.constant 0 : i32
    %c0_i32_1 = arith.constant 0 : i32
    return %c0_i32, %c0_i32_0 : i32, i32
  }
  func.func @transform_6(%arg0: i32) -> (i32, i32) {
    %c0_i32 = arith.constant 0 : i32
    %c0_i32_0 = arith.constant 0 : i32
    %c0_i32_1 = arith.constant 0 : i32
    return %c0_i32, %c0_i32_0 : i32, i32
  }
  func.func @transform_7(%arg0: i32) -> (i32, i32) {
    %c0_i32 = arith.constant 0 : i32
    %c0_i32_0 = arith.constant 0 : i32
    %c0_i32_1 = arith.constant 0 : i32
    return %c0_i32, %c0_i32_0 : i32, i32
  }
  func.func @transform_8(%arg0: i32) -> (i32, i32) {
    %c0_i32 = arith.constant 0 : i32
    %c0_i32_0 = arith.constant 0 : i32
    %c0_i32_1 = arith.constant 0 : i32
    return %c0_i32, %c0_i32_0 : i32, i32
  }
  func.func @transform_9(%arg0: i32) -> (i32, i32) {
    %c0_i32 = arith.constant 0 : i32
    %c0_i32_0 = arith.constant 0 : i32
    %c0_i32_1 = arith.constant 0 : i32
    return %c0_i32, %c0_i32_0 : i32, i32
  }
  func.func @transform_10(%arg0: i32) -> (i32, i32) {
    %c0_i32 = arith.constant 0 : i32
    %c0_i32_0 = arith.constant 0 : i32
    %c0_i32_1 = arith.constant 0 : i32
    return %c0_i32, %c0_i32_0 : i32, i32
  }
  func.func @transform_11(%arg0: i32) -> (i32, i32, i32) {
    %c0_i32 = arith.constant 0 : i32
    %c0_i32_0 = arith.constant 0 : i32
    %c0_i32_1 = arith.constant 0 : i32
    return %arg0, %c0_i32, %c0_i32_0 : i32, i32, i32
  }
}

</mosaic_0001>

<bundles_post_ra>
// kernel: tpu_custom_call.1
= control target key start
LH: loop header
LB: loop body
LE: loop exit
PB: predicated region body
PF: predicated region fallthrough
CT: control target
= control target key end

     0   :  { %s2839_s0 = inlined_call_operand.hbm [shape: f32[2,8,32], index: 0, kind: input, shape index: {}]   ;;  %s2840_s1 = inlined_call_operand.hbm [shape: f32[32,32], index: 1, kind: input, shape index: {}]   ;;  %s2841_s2 = inlined_call_operand.vmem [shape: f32[1,32], index: 2, kind: input, shape index: {}]   ;;  %s2842_s3 = inlined_call_operand.hbm [shape: f32[32,32], index: 3, kind: input, shape index: {}]   ;;  %s2843_s4 = inlined_call_operand.vmem [shape: f32[1,32], index: 4, kind: input, shape index: {}]   ;;  %s2844_s5 = inlined_call_operand.hbm [shape: f32[32,32], index: 5, kind: input, shape index: {}]   ;;  %s2845_s6 = inlined_call_operand.vmem [shape: f32[1,32], index: 6, kind: input, shape index: {}]   ;;  %s2846_s7 = inlined_call_operand.hbm [shape: f32[32,32], index: 7, kind: input, shape index: {}]   ;;  %s2847_s8 = inlined_call_operand.vmem [shape: f32[1,32], index: 8, kind: input, shape index: {}]   ;;  %s2848_s9 = inlined_call_operand.vmem [shape: f32[1,32], index: 9, kind: input, shape index: {}]   ;;  %s2849_s10 = inlined_call_operand.vmem [shape: f32[1,32], index: 10, kind: input, shape index: {}]   ;;  %s2850_s11 = inlined_call_operand.hbm [shape: f32[2,8,32], index: 11, kind: output, shape index: {}]  }
   0x1   :  { %2855 = sst [smem:[#allocation16_spill]] %s2839_s0 }
   0x2   :  { %2856 = sst [smem:[#allocation17_spill]] %s2840_s1 }
   0x3   :  { %2857 = sst [smem:[#allocation18_spill]] %s2848_s9 }
   0x4   :  { %2858 = sst [smem:[#allocation19_spill]] %s2849_s10 }
   0x5   :  { %2859 = sst [smem:[#allocation20_spill]] %s2850_s11 }
   0x6   :  { %16 = vsyncpa [#allocation3], 0 }
   0x7   :  { %18 = vsyncpa [#allocation3 + $0x1], 0 }
   0x8   :  { %19 = vsyncpa [#allocation6], 0 }
   0x9   :  { %20 = vsyncpa [#allocation9], 0 }
   0xa   :  { %21 = vsyncpa [#allocation4], 0 }
   0xb   :  { %23 = vsyncpa [#allocation4 + $0x1], 0  ;;  %s2426_s17 = smov 0   ;;  %s2428_s18 = smov 0  }
   0xc   :  { %s2430_s19 = smov 0   ;;  %s2432_s20 = smov 0  }
   0xd LB: > { %s2352_s21 = smov [#allocation5]   ;;  %s2447_s23 = sadd.s32 4294967295, %s2350_s20   ;;  %s2350_s20 = sphi %s2432_s20, %s2885_s20   ;;  %s2346_s19 = sphi %s2430_s19, %s2884_s19   ;;  %s2342_s18 = sphi %s2428_s18, %s2883_s18   ;;  %s2338_s17 = sphi %s2426_s17, %s2882_s17  }
   0xe   : > { %s308_s22 = sshll.u32 %s2352_s21, 4  ;;  %p1827_p0 = scmp.ge.s32.totalorder %s2350_s20, 1  ;;  %s2452_s22 = int_to_ptr.vmem [resolvable:$true] %s308_s22 }
   0xf   : > { %p2852_p1 = scmp.eq.s32.totalorder %s2447_s23, 0  ;;  %p296_p2 = scmp.lt.s32.totalorder %s2350_s20, 3 }
  0x10   : > { %s2353_s25 = smov [#allocation8]   ;;  %s2354_s28 = smov [#allocation7]  }
  0x11   : > { %p2454_p3 = pnand %p1827_p0, %p296_p2  ;;  %s340_s26 = sshll.u32 %s2353_s25, 4  ;;  %s2467_s26 = int_to_ptr.vmem [resolvable:$true] %s340_s26 }
  0x12   : > { %s324_s29 = sshll.u32 %s2354_s28, 4  ;;  %s2862_s1 = sld [smem:[#allocation17_spill]]  ;;  %s2469_s29 = int_to_ptr.vmem [resolvable:$true] %s324_s29 }
  0x13   : > { %s2860_s24 = scalar_select %p2454_p3, 1, 0 }
  0x14   : > { %p2041_p5 = pneg %p2454_p3 }
  0x16   : > { %p2463_p6 = pnand %p2041_p5, %p2852_p1 }
  0x18   : > { %s2134_s13 = scalar_lea.hbm %s2862_s1, 512  ;;  %p2479_p8 = pneg %p2463_p6 }
  0x19   : > { %p2135_p7 = scmp.ne.s32.totalorder %s2862_s1, %s2134_s13  ;;  %p2141_p11 = scmp.lt.u32.totalorder %s2134_s13, %s2862_s1 }
  0x1b   : > { %p2137_p9 = pnand %p2479_p8, %p2135_p7 }
  0x1d   : > { %p2138_p10 = pneg %p2137_p9 }
  0x1f   : > { %p2143_p12 = pnand %p2141_p11, %p2138_p10 }
  0x21   : > { %2146 = shalt.err (!%p2143_p12)
}
  0x22   : > { %s2147_s28 = scalar_lea.vmem %s2452_s22, 512  ;;  %p2155_p5 = scmp.lt.s32.totalorder %s2452_s22, %s2452_s22 }
  0x23   : > { %p2148_p13 = scmp.ne.s32.totalorder %s2452_s22, %s2147_s28  ;;  %p2156_p4 = scmp.lt.s32.totalorder %s2147_s28, %s2147_s28 }
  0x25   : > { %p2150_p0 = pnand %p2148_p13, %p2479_p8  ;;  %p2157_p7 = por %p2156_p4, %p2155_p5 }
  0x27   : > { %p2151_p2 = pneg %p2150_p0 }
  0x29   : > { %p2158_p9 = pnand %p2157_p7, %p2151_p2 }
  0x2b   : > { %2161 = shalt.err (!%p2158_p9)
}
  0x2c   : > { %s2355_s30 = smov 128   ;;  %s2356_s12 = smov 8  }
  0x2d   : > { %2044 = dma.hbm_to_vmem [thread:$0]  (!%p2463_p6), %s2862_s1, 512, %s2452_s22, [#allocation6], %s2355_s30, %s2355_s30, %s2356_s12  }
  0x2e   : > { %s2162_s25 = scalar_lea.hbm %s2844_s5, 512 }
  0x2f   : > { %p2163_p4 = scmp.ne.s32.totalorder %s2844_s5, %s2162_s25  ;;  %p2169_p12 = scmp.lt.u32.totalorder %s2162_s25, %s2844_s5 }
  0x31   : > { %p2165_p10 = pnand %p2163_p4, %p2479_p8 }
  0x33   : > { %p2166_p11 = pneg %p2165_p10 }
  0x35   : > { %p2171_p13 = pnand %p2169_p12, %p2166_p11 }
  0x37   : > { %2174 = shalt.err (!%p2171_p13)
}
  0x38   : > { %s2175_s22 = scalar_lea.vmem %s2467_s26, 512  ;;  %p2183_p7 = scmp.lt.s32.totalorder %s2467_s26, %s2467_s26 }
  0x39   : > { %p2176_p0 = scmp.ne.s32.totalorder %s2467_s26, %s2175_s22  ;;  %p2184_p9 = scmp.lt.s32.totalorder %s2175_s22, %s2175_s22 }
  0x3b   : > { %p2178_p2 = pnand %p2176_p0, %p2479_p8  ;;  %p2185_p4 = por %p2184_p9, %p2183_p7 }
  0x3d   : > { %p2179_p5 = pneg %p2178_p2 }
  0x3f   : > { %p2186_p10 = pnand %p2185_p4, %p2179_p5 }
  0x41   : > { %2189 = shalt.err (!%p2186_p10)
}
  0x42   : > { %2050 = dma.hbm_to_vmem [thread:$0]  (!%p2463_p6), %s2844_s5, 512, %s2467_s26, [#allocation9], %s2355_s30, %s2355_s30, %s2356_s12  }
  0x43   : > { %s2190_s14 = scalar_lea.hbm %s2842_s3, 512 }
  0x44   : > { %p2191_p11 = scmp.ne.s32.totalorder %s2842_s3, %s2190_s14  ;;  %p2197_p0 = scmp.lt.u32.totalorder %s2190_s14, %s2842_s3 }
  0x46   : > { %p2193_p12 = pnand %p2191_p11, %p2479_p8 }
  0x48   : > { %p2194_p13 = pneg %p2193_p12 }
  0x4a   : > { %p2199_p2 = pnand %p2197_p0, %p2194_p13 }
  0x4c   : > { %2202 = shalt.err (!%p2199_p2)
}
  0x4d   : > { %s2203_s26 = scalar_lea.vmem %s2469_s29, 512  ;;  %p2211_p4 = scmp.lt.s32.totalorder %s2469_s29, %s2469_s29 }
  0x4e   : > { %p2204_p5 = scmp.ne.s32.totalorder %s2469_s29, %s2203_s26  ;;  %p2212_p10 = scmp.lt.s32.totalorder %s2203_s26, %s2203_s26 }
  0x50   : > { %p2206_p7 = pnand %p2204_p5, %p2479_p8  ;;  %p2213_p11 = por %p2212_p10, %p2211_p4 }
  0x52   : > { %p2207_p9 = pneg %p2206_p7 }
  0x54   : > { %p2214_p12 = pnand %p2213_p11, %p2207_p9 }
  0x56   : > { %2217 = shalt.err (!%p2214_p12)
}
  0x57   : > { %2047 = dma.hbm_to_vmem [thread:$0]  (!%p2463_p6), %s2842_s3, 512, %s2469_s29, [#allocation6], %s2355_s30, %s2355_s30, %s2356_s12  }
  0x58   : > { %s2357_s10 = smov [#allocation10]   ;;  %s2218_s15 = scalar_lea.hbm %s2846_s7, 512 }
  0x59   : > { %s356_s11 = sshll.u32 %s2357_s10, 4  ;;  %p2219_p13 = scmp.ne.s32.totalorder %s2846_s7, %s2218_s15  ;;  %s357_s11 = int_to_ptr.vmem [resolvable:$true] %s356_s11 }
  0x5a   : > { %p2225_p5 = scmp.lt.u32.totalorder %s2218_s15, %s2846_s7 }
  0x5b   : > { %p2221_p0 = pnand %p2219_p13, %p2479_p8 }
  0x5d   : > { %p2222_p2 = pneg %p2221_p0 }
  0x5f   : > { %p2227_p7 = pnand %p2225_p5, %p2222_p2 }
  0x61   : > { %2230 = shalt.err (!%p2227_p7)
}
  0x62   : > { %s2231_s29 = scalar_lea.vmem %s357_s11, 512  ;;  %p2239_p11 = scmp.lt.s32.totalorder %s357_s11, %s357_s11 }
  0x63   : > { %p2232_p9 = scmp.ne.s32.totalorder %s357_s11, %s2231_s29  ;;  %p2240_p12 = scmp.lt.s32.totalorder %s2231_s29, %s2231_s29 }
  0x65   : > { %p2234_p4 = pnand %p2232_p9, %p2479_p8  ;;  %p2241_p1 = por %p2240_p12, %p2239_p11 }
  0x67   : > { %p2235_p10 = pneg %p2234_p4 }
  0x69   : > { %p2242_p3 = pnand %p2241_p1, %p2235_p10 }
  0x6b   : > { %2245 = shalt.err (!%p2242_p3)
}
  0x6c   : > { %2053 = dma.hbm_to_vmem [thread:$0]  (!%p2463_p6), %s2846_s7, 512, %s357_s11, [#allocation9], %s2355_s30, %s2355_s30, %s2356_s12  }
  0x6d   : > { %s1826_s27 = sadd.s32 4294967294, %s2350_s20   ;;  %s2578_s16 = sadd.s32 1, %s2350_s20  }
  0x6e   : > { %s33_s10 = ssub.s32 %s2350_s20, %s2578_s16  ;;  %s36_s13 = sadd.s32 1, %s2346_s19 }
  0x6f   : > { %p34_p1 = scmp.eq.s32.totalorder %s33_s10, 0  ;;  %p43_p3 = scmp.ne.s32.totalorder %s2346_s19, %s2342_s18 }
  0x70   : > { %p44_p8 = scmp.eq.s32.totalorder %s2350_s20, 0  ;;  %p49_p13 = scmp.ne.s32.totalorder %s2342_s18, %s2338_s17 }
  0x71   : > { %s2589_s14 = scalar_select %p34_p1, %s2346_s19, %s36_s13  }
  0x72   : > { %p2591_p0 = por %p44_p8, %p43_p3  ;;  %p2865_p2 = scmp.eq.s32.totalorder %s2447_s23, 0 }
  0x73   : > { %p283_p5 = scmp.eq.s32.totalorder %s2447_s23, 1  ;;  %p289_p7 = scmp.eq.s32.totalorder %s1826_s27, 1 }
  0x74   : > { %p2597_p6 = por %p2865_p2, %p49_p13  ;;  %p2066_p9 = scmp.lt.s32.totalorder %s2350_s20, 2 }
  0x75   : > { %s379_s12 = sand.u32 1, %s2346_s19   ;;  %p2604_p4 = por %p283_p5, %p43_p3 }
  0x76   : > { %p2608_p10 = por %p289_p7, %p49_p13  ;;  %s1833_s25 = sshll.u32 %s379_s12, 3 }
  0x77   : > { %s2867_s11 = scalar_select %p2604_p4, 1, 0 }
  0x78   : > { %s2868_s21 = scalar_select %p2608_p10, 1, 0 }
  0x79   : > { %s1834_s28 = sshll.u32 %s2350_s20, 7  ;;  %s2869_s0 = sld [smem:[#allocation16_spill]] }
  0x7a   : > { %s383_s9 = scalar_lea.vmem [#allocation2], %s1833_s25  ;;  %p2622_p11 = pnand %p2066_p9, %p2591_p0 }
  0x7b   : > { %s390_s27 = sshll.u32 %s383_s9, 4  ;;  %s380_s13 = scalar_lea.sflag [#allocation3], %s379_s12  ;;  %s2618_s27 = int_to_ptr.vmem [resolvable:$true] %s390_s27 }
  0x7c   : > { %p2248_p1 = pneg %p2622_p11 }
  0x7f   : > { %s2616_s22 = scalar_lea.hbm %s2869_s0, %s1834_s28  ;;  %s2251_s26 = scalar_lea.hbm %s2869_s0, 256 }
  0x80   : > { %s2246_s1 = scalar_lea.hbm %s2616_s22, 128  ;;  %p2252_p13 = scmp.lt.u32.totalorder %s2616_s22, %s2869_s0 }
  0x81   : > { %p2247_p12 = scmp.ne.s32.totalorder %s2616_s22, %s2246_s1  ;;  %p2253_p0 = scmp.lt.u32.totalorder %s2251_s26, %s2246_s1 }
  0x82   : > { %p2255_p5 = scmp.lt.u32.totalorder %s2246_s1, %s2616_s22 }
  0x83   : > { %p2249_p3 = pnand %p2248_p1, %p2247_p12  ;;  %p2254_p2 = por %p2253_p0, %p2252_p13 }
  0x85   : > { %p2250_p8 = pneg %p2249_p3  ;;  %p2256_p7 = por %p2255_p5, %p2254_p2 }
  0x87   : > { %p2257_p9 = pnand %p2256_p7, %p2250_p8 }
  0x89   : > { %2260 = shalt.err (!%p2257_p9)
}
  0x8a   : > { %s2261_s12 = scalar_lea.vmem %s2618_s27, 128  ;;  %s2358_s9 = smov [#allocation2]  }
  0x8b   : > { %p2262_p12 = scmp.ne.s32.totalorder %s2618_s27, %s2261_s12  ;;  %s2266_s25 = sshll.u32 %s2358_s9, 4  ;;  %s2267_s25 = int_to_ptr.vmem [resolvable:$false] %s2266_s25 }
  0x8c   : > { %s2268_s28 = scalar_lea.vmem %s2267_s25, 256  ;;  %p2269_p4 = scmp.lt.s32.totalorder %s2618_s27, %s2267_s25 }
  0x8d   : > { %p2264_p3 = pnand %p2262_p12, %p2248_p1  ;;  %p2270_p13 = scmp.lt.s32.totalorder %s2268_s28, %s2261_s12 }
  0x8f   : > { %p2265_p10 = pneg %p2264_p3  ;;  %p2271_p0 = por %p2270_p13, %p2269_p4 }
  0x91   : > { %p2272_p2 = pnand %p2271_p0, %p2265_p10 }
  0x93   : > { %2275 = shalt.err (!%p2272_p2)
}
  0x94   : > { %2057 = dma.hbm_to_vmem [thread:$0]  (!%p2622_p11), %s2616_s22, 128, %s2618_s27, %s380_s13  }
  0x95   : > { %p2871_p8 = scmp.ne.s32.totalorder %s2860_s24, 0 }
  0x96   : > { %s2654_s1 = sand.u32 (!%p2871_p8), 1, %s2342_s18  }
  0x97   : > { %399 = sbr.rel (%p2871_p8) target bundleno = 3063 (0xbf7), region = 64  ;;  %s1836_s26 = sshll.u32 (!%p2871_p8), %s2654_s1, 3 }
  0x98   : > { %s402_s15 = scalar_lea.sflag (!%p2871_p8), [#allocation3], %s2654_s1  ;;  %s2660_s29 = scalar_lea.vmem (!%p2871_p8), [#allocation2], %s1836_s26 }
  0x9e   : > { %2321 = dma.done.wait (%p2597_p6), %s402_s15, 128  }
  0x9f   : > { %2323 = vsyncadd (%p2597_p6), %s402_s15, 4294967168  ;;  %p2872_p4 = scmp.eq.s32.totalorder %s2447_s23, 0 }
  0xa1   : > { %2325 = dma.done.wait (%p2872_p4), [#allocation6], 1024   ;;  %p2873_p10 = pmov %p2872_p4 }
  0xa2   : > { %p2874_p11 = pmov %p2872_p4 }
  0xa3   : > { %2327 = vsyncadd (%p2873_p10), [#allocation6], 4294966272 }
  0xa4   : > { %2329 = dma.done.wait (%p2874_p11), [#allocation9], 1024   ;;  %p2875_p1 = pmov %p2872_p4 }
  0xa5   : > { %v2359_v0 = vmov 0.0|0.0   ;;  %vm2360_vm0 = vmmov 0   ;;  %v2361_v1 = vmov 0.0   ;;  %v546_v2 = vld [vmem:[#allocation7] sm:$0xff]  ;;  %v547_v3 = vld [vmem:[#allocation7 + $0x8] sm:$0xff]  ;;  %v548_v7 = vld [vmem:[#allocation7 + $0x10] sm:$0xff] }
  0xa6   : > { %2331 = vsyncadd (%p2875_p1), [#allocation9], 4294966272  ;;  %2009 = vmatprep.subr.bf16.mxu1 %v2359_v0  ;;  %2003 = vmatprep.subr.bf16.mxu0 %v2359_v0  ;;  %v461_v4 = vld [vmem:[#allocation5] sm:$0xff]  ;;  %v2010_v5 = vpack.c.bf16 %v547_v3, %v546_v2  ;;  %v462_v6 = vld [vmem:[#allocation5 + $0x8] sm:$0xff]  ;;  %vm472_vm1 = vcmask 261120   ;;  %vm709_vm2 = vcmask 64512  }
  0xa7   : > { %1929 = vmatprep.mubr.msk.f32.mxu1 %vm2360_vm0, %v2361_v1  ;;  %1918 = vmatprep.mubr.msk.f32.mxu0 %vm2360_vm0, %v2361_v1  ;;  %v549_v8 = vld [vmem:[#allocation7 + $0x18] sm:$0xff]  ;;  %v2004_v9 = vpack.c.bf16 %v462_v6, %v461_v4  ;;  %v463_v10 = vld [vmem:[#allocation5 + $0x10] sm:$0xff]  ;;  %v627_v15 = vld [vmem:[#allocation8] sm:$0xff]  ;;  %s2362_s10 = smov 120   ;;  %s2363_s9 = smov 112  }
  0xa8   : > { %v464_v11 = vld [vmem:[#allocation5 + $0x18] sm:$0xff]  ;;  %2011 = vmatpush3.bf16.msra.mxu1 %v2010_v5  ;;  %v2013_v12 = vpack.c.bf16 %v549_v8, %v548_v7  ;;  %v628_v16 = vld [vmem:[#allocation8 + $0x8] sm:$0xff]  ;;  %v629_v17 = vld [vmem:[#allocation8 + $0x10] sm:$0xff]  ;;  %s2364_s25 = smov 104   ;;  %s2876_s30 = sld [smem:[#allocation18_spill]] }
  0xa9   : > { %2005 = vmatpush3.bf16.msra.mxu0 %v2004_v9  ;;  %2012 = vmatprep.subr.bf16.mxu1 %v2359_v0  ;;  %v2007_v13 = vpack.c.bf16 %v464_v11, %v463_v10  ;;  %v2679_v14 = vld [vmem:[%s2660_s29] sm:$0xff]  ;;  %v2016_v18 = vpack.c.bf16 %v628_v16, %v627_v15  ;;  %v1037_v55 = vld [vmem:[#allocation10 + $0x8] sm:$0xff]  ;;  %v870_v60 = vld [vmem:[#allocation10] sm:$0xff]  ;;  %s1868_s13 = sshll.u32 %s2447_s23, 7  ;;  %s459_s12 = scalar_lea.vmem [#allocation11], %s1836_s26 }
  0xaa   : > { %2006 = vmatprep.subr.bf16.mxu0 %v2359_v0  ;;  %v630_v19 = vld [vmem:[#allocation8 + $0x18] sm:$0xff]  ;;  %v1844_v21 = vld [vmem:[%s2843_s4] ss:$0 sm:$0xff]  ;;  %s2878_s15 = sld [smem:[#allocation20_spill]]  ;;  %s1705_s29 = scalar_lea.sflag [#allocation4], %s2654_s1 }
  0xab   : > { %v2019_v20 = vpack.c.bf16 %v630_v19, %v629_v17  ;;  %v1842_v22 = vld [vmem:[%s2841_s2] ss:$0 sm:$0xff]  ;;  %p2879_p5 = scmp.ne.s32.totalorder %s2867_s11, 0  ;;  %s2365_s23 = smov [#allocation11]  }
  0xac   : > { %2014 = vmatpush3.bf16.msra.mxu1 %v2013_v12  ;;  %v1846_v30 = vld [vmem:[%s2845_s6] ss:$0 sm:$0xff]  ;;  %s2280_s26 = sshll.u32 %s2365_s23, 4  ;;  %s2281_s26 = int_to_ptr.vmem [resolvable:$false] %s2280_s26 }
  0xad   : > { %2008 = vmatpush3.bf16.msra.mxu0 %v2007_v13  ;;  %1943 = vmatprep.subr.mxu1 %v2361_v1 }
  0xae   : > { %2015 = vmatprep.subr.bf16.mxu0 %v2359_v0 }
  0xaf   : > { %1930 = vmatmul.mubr.msk.f32.vlgmr.msra.gmra.mrb[0].mxu1 %vm472_vm1, %v2679_v14 }
  0xb0   : > { %1919 = vmatmul.mubr.msk.f32.vlgmr.msra.gmra.mrb[0].mxu0 %vm472_vm1, %v2679_v14  ;;  %1945 = vmatprep.mubr.msk.f32.mxu1 %vm2360_vm0, %v2361_v1  ;;  %s2794_s0 = scalar_lea.hbm %s2878_s15, %s1868_s13 }
  0xb1   : > { %1940 = vmatprep.mubr.msk.f32.mxu0 %vm2360_vm0, %v2361_v1  ;;  %2017 = vmatpush3.bf16.msra.mxu0 %v2016_v18 }
  0xb2   : > { %2018 = vmatprep.subr.bf16.mxu0 %v2359_v0 }
  0xb5   : > { %2020 = vmatpush3.bf16.msra.mxu0 %v2019_v20 }
  0xb6   : > { %1953 = vmatprep.subr.mxu0 %v2361_v1 }
  0xb8   : > { %1941 = vmatmul.mubr.msk.f32.vlgmr.msra.gmra.mrb[2].mxu0 %vm472_vm1, %v2679_v14 }
  0xb9   : > { %1955 = vmatprep.mubr.msk.f32.mxu0 %vm2360_vm0, %v2361_v1 }
 0x182   : > { %v623_v23 = vpop.f32.mrb[0].mxu1 }
 0x183   : > { %v624_v24 = vadd.f32 %v1844_v21, %v623_v23  ;;  %v542_v25 = vpop.f32.mrb[0].mxu0  ;;  %v1931_v26 = vpop.f32.mrb[1].mxu1 }
 0x184   : > { %v543_v27 = vadd.f32 %v1842_v22, %v542_v25  ;;  %v1920_v28 = vpop.f32.mrb[1].mxu0 }
 0x185   : > { %873 = vrot.lane.b32.xlu0 %v624_v24, %s2362_s10  ;;  %1944 = vmatpush3.xpose.msk.msra.mxu1 %vm709_vm2, %v624_v24 }
 0x186   : > { %v2703_v29 = vmul.f32 0.35355338, %v543_v27  ;;  %1948 = vmatprep.subr.mxu1 %v2361_v1 }
 0x188   : > { %1946 = vmatmul.mubr.msk.f32.vlgmr.msra.gmra.mrb[2].mxu1 %vm709_vm2, %v2703_v29 }
 0x189   : > { %871 = vrot.lane.b32.xlu0 %v2703_v29, %s2362_s10  ;;  %1950 = vmatprep.mubr.msk.f32.mxu1 %vm2360_vm0, %v2361_v1 }
 0x18b   : > { %v704_v31 = vpop.f32.mrb[2].mxu0 }
 0x18c   : > { %v2715_v32 = vadd.f32 %v1846_v30, %v704_v31  ;;  %v1942_v33 = vpop.f32.mrb[3].mxu0 }
 0x18e   : > { %1949 = vmatpush3.msra.mxu1 %v2715_v32 }
 0x18f   : > { %1958 = vmatprep.subr.mxu1 %v2361_v1 }
 0x1f7   : > { %v874_v34 = vpop.permute.xlu0 %873 }
 0x1f8   : > { %1954 = vmatpush3.xpose.msk.msra.mxu0 %vm709_vm2, %v874_v34 }
 0x1f9   : > { %1963 = vmatprep.subr.mxu0 %v2361_v1 }
 0x1fb   : > { %v872_v35 = vpop.permute.xlu0 %871 }
 0x1fc   : > { %1956 = vmatmul.mubr.msk.f32.vlgmr.msra.gmra.mrb[4].mxu0 %vm709_vm2, %v872_v35 }
 0x1fd   : > { %1965 = vmatprep.mubr.msk.f32.mxu0 %vm2360_vm0, %v2361_v1  ;;  %1964 = vmatpush3.msra.mxu0 %v1037_v55 }
 0x1fe   : > { %1973 = vmatprep.subr.mxu0 %v2361_v1 }
 0x25b   : > { %v782_v36 = vpop.f32.mrb[2].mxu1 }
 0x25c   : > { %v1947_v37 = vpop.f32.mrb[3].mxu1  ;;  %v786_v38 = vsel %vm709_vm2, %v782_v36, -inf }
 0x25d   : > { %787 = vmax.xlane.f32.xlu1 %v786_v38 }
 0x2cf   : > { %v945_v39 = vpop.f32.mrb[4].mxu0 }
 0x2d0   : > { %v1957_v40 = vpop.f32.mrb[5].mxu0  ;;  %v949_v41 = vsel %vm709_vm2, %v945_v39, -inf }
 0x2d1   : > { %950 = vmax.xlane.f32.xlu1 %v949_v41 }
 0x2ea   : > { %v788_v42 = vpop.xlane.xlu1 %787 }
 0x2eb   : > { %v789_v43 = vsub.f32 %v782_v36, %v788_v42  ;;  %v1589_v36 = vld [vmem:[#allocation10 + $0x18] sm:$0xff] }
 0x2ed   : > { %v790_v44 = vmul.f32 1.442695, %v789_v43 }
 0x2ef   : > { %2116 = vpow2.f32 %v790_v44 }
 0x2f9   : > { %v2117_v45 = vpop.eup %2116 }
 0x2fa   : > { %v792_v46 = vsel %vm709_vm2, %v2117_v45, 0.0 }
 0x2fb   : > { %793 = vadd.xlane.f32.xlu0 %v792_v46 }
 0x311   : > { %1273 = vrot.lane.b32.xlu0 %v2715_v32, %s2363_s9 }
 0x315   : > { %1426 = vrot.lane.b32.xlu0 %v624_v24, %s2364_s25 }
 0x35e   : > { %v951_v47 = vpop.xlane.xlu1 %950 }
 0x35f   : > { %v952_v48 = vsub.f32 %v945_v39, %v951_v47 }
 0x361   : > { %v953_v49 = vmul.f32 1.442695, %v952_v48 }
 0x363   : > { %2118 = vpow2.f32 %v953_v49 }
 0x36d   : > { %v2119_v50 = vpop.eup %2118 }
 0x36e   : > { %v955_v51 = vsel %vm709_vm2, %v2119_v50, 0.0 }
 0x36f   : > { %956 = vadd.xlane.f32.xlu1 %v955_v51 }
 0x380   : > { %961 = vrot.lane.b32.xlu1 %v2715_v32, %s2362_s10  ;;  %s2877_s10 = sld [smem:[#allocation19_spill]] }
 0x384   : > { %1186 = vrot.lane.b32.xlu1 %v624_v24, %s2363_s9  ;;  %v1349_v24 = vld [vmem:[#allocation10 + $0x10] sm:$0xff] }
 0x388   : > { %v794_v52 = vpop.xlane.xlu0 %793  ;;  %1184 = vrot.lane.b32.xlu1 %v2703_v29, %s2363_s9  ;;  %s1718_s9 = sshll.u32 %s459_s12, 4  ;;  %s2796_s9 = int_to_ptr.vmem [resolvable:$true] %s1718_s9 }
 0x389   : > { %2120 = vrcp.f32 %v794_v52  ;;  %s2276_s24 = scalar_lea.vmem %s2796_s9, 128  ;;  %p2283_p12 = scmp.lt.s32.totalorder %s2796_s9, %s2281_s26 }
 0x38a   : > { %p2277_p6 = scmp.ne.s32.totalorder %s2796_s9, %s2276_s24 }
 0x38c   : > { %v1274_v62 = vpop.permute.xlu0 %1273  ;;  %p2278_p7 = pnand %p2277_p6, %p2879_p5 }
 0x38e   : > { %p2279_p9 = pneg %p2278_p7 }
 0x390   : > { %v1427_v19 = vpop.permute.xlu0 %1426 }
 0x393   : > { %v2121_v53 = vpop.eup %2120 }
 0x394   : > { %v796_v54 = vmul.f32 %v2121_v53, %v2117_v45 }
 0x396   : > { %1951 = vmatmul.mubr.msk.f32.vlgmr.msra.gmra.mrb[4].mxu1 %vm709_vm2, %v796_v54 }
 0x397   : > { %1960 = vmatprep.mubr.msk.f32.mxu1 %vm2360_vm0, %v2361_v1 }
 0x3fc   : > { %v957_v56 = vpop.xlane.xlu1 %956 }
 0x3fd   : > { %2122 = vrcp.f32 %v957_v56 }
 0x400   : > { %v962_v57 = vpop.permute.xlu1 %961 }
 0x401   : > { %1959 = vmatpush3.msra.mxu1 %v962_v57 }
 0x402   : > { %1968 = vmatprep.subr.mxu1 %v2361_v1 }
 0x404   : > { %v1187_v0 = vpop.permute.xlu1 %1186 }
 0x407   : > { %v2123_v58 = vpop.eup %2122 }
 0x408   : > { %v959_v59 = vmul.f32 %v2123_v58, %v2119_v50  ;;  %v1185_v4 = vpop.permute.xlu1 %1184 }
 0x40a   : > { %1961 = vmatmul.mubr.msk.f32.vlgmr.msra.gmra.mrb[6].mxu1 %vm709_vm2, %v959_v59 }
 0x40b   : > { %1969 = vmatpush3.msra.mxu1 %v870_v60  ;;  %1970 = vmatprep.mubr.msk.f32.mxu1 %vm2360_vm0, %v2361_v1 }
 0x40c   : > { %1978 = vmatprep.subr.mxu1 %v2361_v1 }
 0x469   : > { %v866_v61 = vpop.f32.mrb[4].mxu1 }
 0x46a   : > { %v1952_v63 = vpop.f32.mrb[5].mxu1  ;;  %1971 = vmatmul.mubr.msk.f32.vlgmr.msra.gmra.mrb[8].mxu1 %vm709_vm2, %v866_v61  ;;  %v1866_v61 = vld [vmem:[%s2877_s10] ss:$0 sm:$0xff] }
 0x46b   : > { %1979 = vmatpush3.msra.mxu1 %v1274_v62  ;;  %1980 = vmatprep.mubr.msk.f32.mxu1 %vm2360_vm0, %v2361_v1 }
 0x46c   : > { %1988 = vmatprep.subr.mxu1 %v2361_v1 }
 0x4dd   : > { %v1033_v2 = vpop.f32.mrb[6].mxu1 }
 0x4de   : > { %v1962_v3 = vpop.f32.mrb[7].mxu1  ;;  %1966 = vmatmul.mubr.msk.f32.vlgmr.msra.gmra.mrb[6].mxu0 %vm709_vm2, %v1033_v2 }
 0x4df   : > { %1974 = vmatpush3.xpose.msk.msra.mxu0 %vm709_vm2, %v1187_v0  ;;  %1975 = vmatprep.mubr.msk.f32.mxu0 %vm2360_vm0, %v2361_v1 }
 0x4e0   : > { %1983 = vmatprep.subr.mxu0 %v2361_v1 }
 0x4e2   : > { %1976 = vmatmul.mubr.msk.f32.vlgmr.msra.gmra.mrb[8].mxu0 %vm709_vm2, %v1185_v4 }
 0x4e3   : > { %1985 = vmatprep.mubr.msk.f32.mxu0 %vm2360_vm0, %v2361_v1  ;;  %1984 = vmatpush3.msra.mxu0 %v1349_v24 }
 0x4e4   : > { %1993 = vmatprep.subr.mxu0 %v2361_v1 }
 0x53d   : > { %v1180_v5 = vpop.f32.mrb[8].mxu1 }
 0x53e   : > { %v1972_v6 = vpop.f32.mrb[9].mxu1 }
 0x5b1   : > { %v1107_v7 = vpop.f32.mrb[6].mxu0 }
 0x5b2   : > { %v1181_v8 = vadd.f32 %v1180_v5, %v1107_v7  ;;  %v1967_v9 = vpop.f32.mrb[7].mxu0 }
 0x5b5   : > { %v1258_v10 = vpop.f32.mrb[8].mxu0 }
 0x5b6   : > { %v1977_v11 = vpop.f32.mrb[9].mxu0  ;;  %v1262_v12 = vsel %vm709_vm2, %v1258_v10, -inf }
 0x5b7   : > { %1263 = vmax.xlane.f32.xlu1 %v1262_v12 }
 0x644   : > { %v1264_v13 = vpop.xlane.xlu1 %1263 }
 0x645   : > { %v1265_v15 = vsub.f32 %v1258_v10, %v1264_v13 }
 0x647   : > { %v1266_v16 = vmul.f32 1.442695, %v1265_v15 }
 0x649   : > { %2124 = vpow2.f32 %v1266_v16 }
 0x653   : > { %v2125_v17 = vpop.eup %2124 }
 0x654   : > { %v1268_v18 = vsel %vm709_vm2, %v2125_v17, 0.0 }
 0x655   : > { %1269 = vadd.xlane.f32.xlu0 %v1268_v18 }
 0x66b   : > { %1424 = vrot.lane.b32.xlu0 %v2703_v29, %s2364_s25 }
 0x6e2   : > { %v1270_v20 = vpop.xlane.xlu0 %1269 }
 0x6e3   : > { %2126 = vrcp.f32 %v1270_v20 }
 0x6e6   : > { %v1425_v23 = vpop.permute.xlu0 %1424 }
 0x6ed   : > { %v2127_v21 = vpop.eup %2126 }
 0x6ee   : > { %v1272_v22 = vmul.f32 %v2127_v21, %v2125_v17 }
 0x6f0   : > { %1981 = vmatmul.mubr.msk.f32.vlgmr.msra.gmra.mrb[10].mxu1 %vm709_vm2, %v1272_v22 }
 0x6f1   : > { %1989 = vmatpush3.xpose.msk.msra.mxu1 %vm709_vm2, %v1427_v19  ;;  %1990 = vmatprep.mubr.msk.f32.mxu1 %vm2360_vm0, %v2361_v1 }
 0x6f2   : > { %1998 = vmatprep.subr.mxu1 %v2361_v1 }
 0x6f4   : > { %1991 = vmatmul.mubr.msk.f32.vlgmr.msra.gmra.mrb[12].mxu1 %vm709_vm2, %v1425_v23 }
 0x6f5   : > { %2000 = vmatprep.mubr.msk.f32.mxu1 %vm2360_vm0, %v2361_v1  ;;  %1999 = vmatpush3.msra.mxu1 %v1589_v36 }
 0x7c3   : > { %v1345_v25 = vpop.f32.mrb[10].mxu1 }
 0x7c4   : > { %v1982_v26 = vpop.f32.mrb[11].mxu1  ;;  %1986 = vmatmul.mubr.msk.f32.vlgmr.msra.gmra.mrb[10].mxu0 %vm709_vm2, %v1345_v25 }
 0x7c5   : > { %1995 = vmatprep.mubr.msk.f32.mxu0 %vm2360_vm0, %v2361_v1 }
 0x7c7   : > { %v1498_v27 = vpop.f32.mrb[12].mxu1 }
 0x7c8   : > { %v1992_v28 = vpop.f32.mrb[13].mxu1  ;;  %v1502_v29 = vsel %vm709_vm2, %v1498_v27, -inf }
 0x7c9   : > { %1503 = vmax.xlane.f32.xlu0 %v1502_v29 }
 0x856   : > { %v1504_v30 = vpop.xlane.xlu0 %1503 }
 0x857   : > { %v1505_v31 = vsub.f32 %v1498_v27, %v1504_v30 }
 0x859   : > { %v1506_v33 = vmul.f32 1.442695, %v1505_v31 }
 0x85b   : > { %2128 = vpow2.f32 %v1506_v33 }
 0x865   : > { %v2129_v34 = vpop.eup %2128 }
 0x866   : > { %v1508_v35 = vsel %vm709_vm2, %v2129_v34, 0.0 }
 0x867   : > { %1509 = vadd.xlane.f32.xlu1 %v1508_v35 }
 0x878   : > { %1513 = vrot.lane.b32.xlu1 %v2715_v32, %s2364_s25  ;;  %v1864_v32 = vld [vmem:[%s2847_s8] ss:$0 sm:$0xff] }
 0x897   : > { %v1419_v37 = vpop.f32.mrb[10].mxu0 }
 0x898   : > { %v1423_v1 = vadd.f32 %v1419_v37, %v1181_v8  ;;  %v1987_v38 = vpop.f32.mrb[11].mxu0 }
 0x8f4   : > { %v1510_v39 = vpop.xlane.xlu1 %1509 }
 0x8f5   : > { %2130 = vrcp.f32 %v1510_v39 }
 0x8f8   : > { %v1514_v40 = vpop.permute.xlu1 %1513 }
 0x8f9   : > { %1994 = vmatpush3.msra.mxu0 %v1514_v40 }
 0x8ff   : > { %v2131_v41 = vpop.eup %2130 }
 0x900   : > { %v1512_v42 = vmul.f32 %v2131_v41, %v2129_v34 }
 0x902   : > { %1996 = vmatmul.mubr.msk.f32.vlgmr.msra.gmra.mrb[12].mxu0 %vm709_vm2, %v1512_v42 }
 0x9d5   : > { %v1585_v43 = vpop.f32.mrb[12].mxu0 }
 0x9d6   : > { %v1997_v44 = vpop.f32.mrb[13].mxu0  ;;  %2001 = vmatmul.mubr.msk.f32.vlgmr.msra.gmra.mrb[14].mxu1 %vm709_vm2, %v1585_v43 }
 0xaa9   : > { %v1659_v45 = vpop.f32.mrb[14].mxu1 }
 0xaaa   : > { %v1663_v46 = vadd.f32 %v1659_v45, %v1423_v1  ;;  %v2002_v47 = vpop.f32.mrb[15].mxu1 }
 0xaac   : > { %v1671_v48 = vadd.f32 %v1864_v32, %v1663_v46 }
 0xaae   : > { %v1672_v49 = vadd.f32 %v1671_v48, %v2679_v14  ;;  %v1865_v14 = vld [vmem:[%s2876_s30] ss:$0 sm:$0xff]  ;;  %s2282_s30 = scalar_lea.vmem %s2281_s26, 256 }
 0xaaf   : > { %p2284_p3 = scmp.lt.s32.totalorder %s2282_s30, %s2276_s24 }
 0xab0   : > { %v1673_v50 = vsel %vm472_vm1, %v1672_v49, 0.0 }
 0xab1   : > { %1674 = vadd.xlane.f32.xlu1 %v1673_v50  ;;  %p2285_p13 = por %p2284_p3, %p2283_p12 }
 0xab3   : > { %p2286_p0 = pnand %p2285_p13, %p2279_p9 }
 0xb3e   : > { %v1675_v51 = vpop.xlane.xlu1 %1674 }
 0xb3f   : > { %v1677_v52 = vmul.f32 0.03125, %v1675_v51 }
 0xb41   : > { %v1678_v53 = vsub.f32 %v1672_v49, %v1677_v52 }
 0xb43   : > { %v1679_v54 = vmul.f32 %v1678_v53, %v1678_v53 }
 0xb45   : > { %v1680_v55 = vsel %vm472_vm1, %v1679_v54, 0.0 }
 0xb46   : > { %1681 = vadd.xlane.f32.xlu0 %v1680_v55 }
 0xbd3   : > { %v1682_v56 = vpop.xlane.xlu0 %1681 }
 0xbd4   : > { %v1683_v57 = vmul.f32 0.03125, %v1682_v56 }
 0xbd6   : > { %v1684_v58 = vadd.f32 1e-05, %v1683_v57 }
 0xbd8   : > { %2132 = vrsqrt.f32 %v1684_v58 }
 0xbe2   : > { %v2133_v59 = vpop.eup %2132 }
 0xbe3   : > { %v1686_v60 = vmul.f32 %v2133_v59, %v1678_v53 }
 0xbe5   : > { %v1694_v62 = vmul.f32 %v1865_v14, %v1686_v60 }
 0xbe7   : > { %v1702_v63 = vadd.f32 %v1866_v61, %v1694_v62 }
 0xbe9   : > { %1703 = vst.msk [vmem:[%s459_s12] sm:$0xff] %vm472_vm1, %v1702_v63 }
 0xbea   : > { %2289 = shalt.err (!%p2286_p0)
}
 0xbeb   : > { %s2290_s1 = scalar_lea.hbm %s2794_s0, 128  ;;  %s2294_s10 = scalar_lea.hbm %s2878_s15, 256 }
 0xbec   : > { %p2291_p2 = scmp.ne.s32.totalorder %s2794_s0, %s2290_s1  ;;  %p2295_p10 = scmp.lt.u32.totalorder %s2794_s0, %s2878_s15 }
 0xbed   : > { %p2296_p11 = scmp.lt.u32.totalorder %s2294_s10, %s2290_s1  ;;  %p2298_p6 = scmp.lt.u32.totalorder %s2290_s1, %s2794_s0 }
 0xbee   : > { %p2292_p8 = pnand %p2291_p2, %p2879_p5 }
 0xbef   : > { %p2297_p1 = por %p2296_p11, %p2295_p10 }
 0xbf0   : > { %p2293_p4 = pneg %p2292_p8 }
 0xbf1   : > { %p2299_p7 = por %p2298_p6, %p2297_p1 }
 0xbf3   : > { %p2300_p9 = pnand %p2299_p7, %p2293_p4 }
 0xbf5   : > { %2303 = shalt.err (!%p2300_p9)
}
 0xbf6   : > { %2039 = dma.vmem_to_hbm [thread:$0]  (%p2879_p5), %s2796_s9, 128, %s2794_s0, %s1705_s29  }
 0xbf7 PF: > { %s1730_s25 = sand.u32 1, %s2338_s17   ;;  %p2880_p12 = scmp.ne.s32.totalorder %s2868_s21, 0 }
 0xbf8   : > { %p2881_p3 = scmp.ge.s32.totalorder %s2350_s20, 2  ;;  %s1731_s28 = scalar_lea.sflag [#allocation4], %s1730_s25 }
 0xbfa   : > { %p2059_p13 = pnand %p2881_p3, %p2880_p12 }
 0xbfc   : > { %2333 = dma.done.wait (!%p2059_p13), %s1731_s28, 128  }
 0xbfd   : > { %2335 = vsyncadd (!%p2059_p13), %s1731_s28, 4294967168  ;;  %p26_p0 = scmp.ge.s32.totalorder %s2578_s16, 4   ;;  %s2882_s17 = smov %s2342_s18 }
 0xbfe   : > { %s2883_s18 = smov %s2346_s19  ;;  %s2884_s19 = smov %s2589_s14 }
 0xbff   : > { %s2885_s20 = smov %s2578_s16  ;;  %28 = sbr.rel (!%p26_p0) target bundleno = 13 (0xd), region = 125 }
 0xc06   :  { %1736 = vsyncpa [#allocation3], 1 }
 0xc07   :  { %1738 = vsyncpa [#allocation3 + $0x1], 1 }
 0xc08   :  { %1739 = vsyncpa [#allocation6], 1 }
 0xc09   :  { %1740 = vsyncpa [#allocation9], 1 }
 0xc0a   :  { %1741 = vsyncpa [#allocation4], 1 }
 0xc0b   :  { %1743 = vsyncpa [#allocation4 + $0x1], 1 }

</bundles_post_ra>
